<compile_context>
chip_gen: v5e
topology: v5e:2x2
jax: 0.10.0
libtpu: 0.0.40
codegen_flags: <defaults>
</compile_context>

<pallas_src>
import jax
import jax.numpy as jnp
from jax import lax
from jax.experimental import pallas as pl
from jax.experimental.pallas import tpu as pltpu

LEAK = 0.2
BN_EPS = 1e-5


def _dsconv_kernel(taps_ref, dwf_ref, b1_ref, pwf_ref, b2_ref, o_ref):
    # taps_ref: (9, C, S)       9 stride-2 taps, contiguous, spatial on lanes
    # dwf_ref : (9, C, 1)       depthwise weights with BN1 scale folded in
    # b1_ref  : (C, 1)          BN1 folded bias
    # pwf_ref : (C, Cout, 1)    pointwise weights with BN2 scale folded in
    # b2_ref  : (Cout, 1)       BN2 folded bias
    # o_ref   : (Cout, S)
    C = taps_ref.shape[1]

    # Load the small weight tensors once (hoisted out of the unrolled loops).
    dwf = dwf_ref[...].astype(jnp.float32)          # (9, C, 1)
    pwf = pwf_ref[...].astype(jnp.float32)          # (C, Cout, 1)

    # ---- depthwise 3x3 / stride-2 conv: 9 contiguous-tap VPU FMAs ----
    acc = taps_ref[0].astype(jnp.float32) * dwf[0]              # (C, S)
    for t in range(1, 9):
        acc = acc + taps_ref[t].astype(jnp.float32) * dwf[t]

    # ---- BN1 (scale folded into weights) bias + LeakyReLU(0.2) ----
    h = acc + b1_ref[...].astype(jnp.float32)                   # (C, S)
    h = jnp.where(h > 0, h, LEAK * h)

    # ---- pointwise 1x1 conv as C broadcast FMAs (skip the padded MXU) ----
    y = pwf[0] * h[0:1, :]                                       # (Cout, S)
    for c in range(1, C):
        y = y + pwf[c] * h[c:c + 1, :]

    # ---- BN2 bias + LeakyReLU(0.2), lane-dense store ----
    y = y + b2_ref[...].astype(jnp.float32)
    y = jnp.where(y > 0, y, LEAK * y)
    o_ref[...] = y.astype(o_ref.dtype)


def _pick_spatial_block(s_total, max_bs=1024):
    """Largest lane-friendly spatial block that divides Ho*Wo."""
    if s_total <= max_bs:
        return s_total
    start = max_bs - (max_bs % 128)
    for bs in range(start, 0, -128):
        if s_total % bs == 0:
            return bs
    return s_total


def dsconv_forward(x_nchw, dw_w, pw_w, g1, be1, rm1, rv1, g2, be2, rm2, rv2,
                   *, stride=2):
    """x_nchw: (N, C, H, W).  dw_w: (C,1,3,3).  pw_w: (Cout,C,1,1)."""
    N, C, H, W = x_nchw.shape
    Cout = pw_w.shape[0]
    Ho = (H + 2 - 3) // stride + 1
    Wo = (W + 2 - 3) // stride + 1
    S = Ho * Wo

    # ---- fold BatchNorm (eval mode) into conv weights + per-channel bias ----
    s1 = g1 / jnp.sqrt(rv1 + BN_EPS)                              # (C,)
    b1 = (be1 - rm1 * s1).reshape(C, 1).astype(jnp.float32)
    s2 = g2 / jnp.sqrt(rv2 + BN_EPS)                              # (Cout,)
    b2 = (be2 - rm2 * s2).reshape(Cout, 1).astype(jnp.float32)

    # depthwise weights * BN1 scale -> (9, C, 1), tap index t = 3*di + dj
    dwf = (dw_w[:, 0, :, :] * s1[:, None, None]).reshape(C, 9)    # (C, 9)
    dwf = jnp.transpose(dwf, (1, 0)).reshape(9, C, 1).astype(jnp.float32)

    # pointwise weights * BN2 scale -> (C, Cout, 1)
    pwf = (pw_w[:, :, 0, 0] * s2[:, None])                        # (Cout, C)
    pwf = jnp.transpose(pwf, (1, 0)).reshape(C, Cout, 1).astype(jnp.float32)

    # ---- pad + extract the 9 stride-`stride` taps (contiguous for kernel) ----
    x_pad = jnp.pad(x_nchw, ((0, 0), (0, 0), (1, 1), (1, 1)))     # (N,C,H+2,W+2)
    taps = []
    for di in range(3):
        for dj in range(3):
            t = lax.slice(
                x_pad,
                (0, 0, di, dj),
                (N, C, di + stride * (Ho - 1) + 1, dj + stride * (Wo - 1) + 1),
                (1, 1, stride, stride))                           # (N,C,Ho,Wo)
            taps.append(t.reshape(N, C, S))
    taps = jnp.stack(taps, axis=1)                                # (N, 9, C, S)

    # ---- Pallas call: grid over (batch, spatial blocks), all parallel ----
    bs = _pick_spatial_block(S)
    nsb = S // bs

    out = pl.pallas_call(
        _dsconv_kernel,
        out_shape=jax.ShapeDtypeStruct((N, Cout, S), x_nchw.dtype),
        grid_spec=pltpu.PrefetchScalarGridSpec(
            num_scalar_prefetch=0,
            grid=(N, nsb),
            in_specs=[
                pl.BlockSpec((None, 9, C, bs), lambda n, s: (n, 0, 0, s)),
                pl.BlockSpec((9, C, 1), lambda n, s: (0, 0, 0)),
                pl.BlockSpec((C, 1), lambda n, s: (0, 0)),
                pl.BlockSpec((C, Cout, 1), lambda n, s: (0, 0, 0)),
                pl.BlockSpec((Cout, 1), lambda n, s: (0, 0)),
            ],
            out_specs=pl.BlockSpec((None, Cout, bs), lambda n, s: (n, 0, s)),
        ),
        compiler_params=pltpu.CompilerParams(
            dimension_semantics=("parallel", "parallel")),
    )(taps, dwf, b1, pwf, b2)

    # (N, Cout, Ho*Wo) is already NCHW after a free reshape (no transpose).
    return out.reshape(N, Cout, Ho, Wo)


def _reference(x, dw_w, pw_w, g1, be1, rm1, rv1, g2, be2, rm2, rv2, *, stride):
    """Pure-JAX reference matching the PyTorch module (eval-mode BN)."""
    C = x.shape[1]
    s1 = g1 / jnp.sqrt(rv1 + BN_EPS)
    b1 = be1 - rm1 * s1
    s2 = g2 / jnp.sqrt(rv2 + BN_EPS)
    b2 = be2 - rm2 * s2

    y = lax.conv_general_dilated(
        x, dw_w, (stride, stride), ((1, 1), (1, 1)),
        feature_group_count=C,
        dimension_numbers=("NCHW", "OIHW", "NCHW"),
        precision=lax.Precision.HIGHEST)
    y = y * s1[None, :, None, None] + b1[None, :, None, None]
    y = jnp.where(y > 0, y, LEAK * y)

    z = lax.conv_general_dilated(
        y, pw_w, (1, 1), ((0, 0), (0, 0)),
        dimension_numbers=("NCHW", "OIHW", "NCHW"),
        precision=lax.Precision.HIGHEST)
    z = z * s2[None, :, None, None] + b2[None, :, None, None]
    z = jnp.where(z > 0, z, LEAK * z)
    return z


if __name__ == "__main__":
    N, C, H, W, Cout, stride = 2, 4, 16, 16, 8, 2

    key = jax.random.PRNGKey(0)
    ks = jax.random.split(key, 12)
    x = jax.random.normal(ks[0], (N, C, H, W), jnp.float32)

    # Deterministic synthetic parameters (shapes from the module __init__).
    dw_w = 0.3 * jax.random.normal(ks[1], (C, 1, 3, 3), jnp.float32)
    pw_w = 0.3 * jax.random.normal(ks[2], (Cout, C, 1, 1), jnp.float32)
    g1 = 1.0 + 0.1 * jax.random.normal(ks[3], (C,), jnp.float32)
    be1 = 0.1 * jax.random.normal(ks[4], (C,), jnp.float32)
    rm1 = 0.1 * jax.random.normal(ks[5], (C,), jnp.float32)
    rv1 = 0.5 + 0.5 * jnp.abs(jax.random.normal(ks[6], (C,), jnp.float32))
    g2 = 1.0 + 0.1 * jax.random.normal(ks[7], (Cout,), jnp.float32)
    be2 = 0.1 * jax.random.normal(ks[8], (Cout,), jnp.float32)
    rm2 = 0.1 * jax.random.normal(ks[9], (Cout,), jnp.float32)
    rv2 = 0.5 + 0.5 * jnp.abs(jax.random.normal(ks[10], (Cout,), jnp.float32))

    out = dsconv_forward(x, dw_w, pw_w, g1, be1, rm1, rv1, g2, be2, rm2, rv2,
                         stride=stride)
    out = jax.block_until_ready(out)

    ref = _reference(x, dw_w, pw_w, g1, be1, rm1, rv1, g2, be2, rm2, rv2,
                     stride=stride)
    assert out.shape == (N, Cout, H // stride, W // stride), out.shape
    if not jnp.allclose(out, ref, rtol=1e-4, atol=1e-4):
        raise AssertionError("Pallas _DSConv output mismatch vs JAX reference")

    print("KERNEL_OK")
</pallas_src>

<mosaic_0001>
module attributes {stable_mosaic.version = 11 : i64} {
  func.func @_dsconv_kernel(%arg0: i32, %arg1: i32, %arg2: memref<1x9x4x64xf32, #tpu.memory_space<vmem>>, %arg3: memref<9x4x1xf32, #tpu.memory_space<vmem>>, %arg4: memref<4x1xf32, #tpu.memory_space<vmem>>, %arg5: memref<4x8x1xf32, #tpu.memory_space<vmem>>, %arg6: memref<8x1xf32, #tpu.memory_space<vmem>>, %arg7: memref<1x8x64xf32, #tpu.memory_space<vmem>>) attributes {dimension_semantics = [#tpu.dimension_semantics<parallel>, #tpu.dimension_semantics<parallel>], iteration_bounds = array<i64: 2, 1>, scalar_prefetch = 0 : i64, scratch_operands = 0 : i64, tpu.core_type = #tpu.core_type<tc>, window_params = [{transform_indices = @transform_0, window_bounds = array<i64: 1, 9, 4, 64>}, {pipeline_mode = #tpu.pipeline_mode<synchronous>, transform_indices = @transform_1, window_bounds = array<i64: 9, 4, 1>}, {pipeline_mode = #tpu.pipeline_mode<synchronous>, transform_indices = @transform_2, window_bounds = array<i64: 4, 1>}, {pipeline_mode = #tpu.pipeline_mode<synchronous>, transform_indices = @transform_3, window_bounds = array<i64: 4, 8, 1>}, {pipeline_mode = #tpu.pipeline_mode<synchronous>, transform_indices = @transform_4, window_bounds = array<i64: 8, 1>}, {transform_indices = @transform_5, window_bounds = array<i64: 1, 8, 64>}]} {
    %c0 = arith.constant 0 : index
    %c0_0 = arith.constant 0 : index
    %c0_1 = arith.constant 0 : index
    %0 = vector.load %arg3[%c0, %c0_0, %c0_1] : memref<9x4x1xf32, #tpu.memory_space<vmem>>, vector<9x4x1xf32>
    %c0_2 = arith.constant 0 : index
    %c0_3 = arith.constant 0 : index
    %c0_4 = arith.constant 0 : index
    %1 = vector.load %arg5[%c0_2, %c0_3, %c0_4] : memref<4x8x1xf32, #tpu.memory_space<vmem>>, vector<4x8x1xf32>
    %c0_5 = arith.constant 0 : index
    %c0_6 = arith.constant 0 : index
    %c0_7 = arith.constant 0 : index
    %c0_8 = arith.constant 0 : index
    %2 = vector.load %arg2[%c0_5, %c0_6, %c0_7, %c0_8] : memref<1x9x4x64xf32, #tpu.memory_space<vmem>>, vector<1x1x4x64xf32>
    %3 = vector.shape_cast %2 : vector<1x1x4x64xf32> to vector<4x64xf32>
    %4 = vector.extract_strided_slice %0 {offsets = [0, 0, 0], sizes = [1, 4, 1], strides = [1, 1, 1]} : vector<9x4x1xf32> to vector<1x4x1xf32>
    %5 = vector.shape_cast %4 : vector<1x4x1xf32> to vector<4x1xf32>
    %6 = vector.broadcast %5 : vector<4x1xf32> to vector<4x64xf32>
    %7 = arith.mulf %3, %6 : vector<4x64xf32>
    %c0_9 = arith.constant 0 : index
    %c1 = arith.constant 1 : index
    %c0_10 = arith.constant 0 : index
    %c0_11 = arith.constant 0 : index
    %8 = vector.load %arg2[%c0_9, %c1, %c0_10, %c0_11] : memref<1x9x4x64xf32, #tpu.memory_space<vmem>>, vector<1x1x4x64xf32>
    %9 = vector.shape_cast %8 : vector<1x1x4x64xf32> to vector<4x64xf32>
    %10 = vector.extract_strided_slice %0 {offsets = [1, 0, 0], sizes = [1, 4, 1], strides = [1, 1, 1]} : vector<9x4x1xf32> to vector<1x4x1xf32>
    %11 = vector.shape_cast %10 : vector<1x4x1xf32> to vector<4x1xf32>
    %12 = vector.broadcast %11 : vector<4x1xf32> to vector<4x64xf32>
    %13 = arith.mulf %9, %12 : vector<4x64xf32>
    %14 = arith.addf %7, %13 : vector<4x64xf32>
    %c0_12 = arith.constant 0 : index
    %c2 = arith.constant 2 : index
    %c0_13 = arith.constant 0 : index
    %c0_14 = arith.constant 0 : index
    %15 = vector.load %arg2[%c0_12, %c2, %c0_13, %c0_14] : memref<1x9x4x64xf32, #tpu.memory_space<vmem>>, vector<1x1x4x64xf32>
    %16 = vector.shape_cast %15 : vector<1x1x4x64xf32> to vector<4x64xf32>
    %17 = vector.extract_strided_slice %0 {offsets = [2, 0, 0], sizes = [1, 4, 1], strides = [1, 1, 1]} : vector<9x4x1xf32> to vector<1x4x1xf32>
    %18 = vector.shape_cast %17 : vector<1x4x1xf32> to vector<4x1xf32>
    %19 = vector.broadcast %18 : vector<4x1xf32> to vector<4x64xf32>
    %20 = arith.mulf %16, %19 : vector<4x64xf32>
    %21 = arith.addf %14, %20 : vector<4x64xf32>
    %c0_15 = arith.constant 0 : index
    %c3 = arith.constant 3 : index
    %c0_16 = arith.constant 0 : index
    %c0_17 = arith.constant 0 : index
    %22 = vector.load %arg2[%c0_15, %c3, %c0_16, %c0_17] : memref<1x9x4x64xf32, #tpu.memory_space<vmem>>, vector<1x1x4x64xf32>
    %23 = vector.shape_cast %22 : vector<1x1x4x64xf32> to vector<4x64xf32>
    %24 = vector.extract_strided_slice %0 {offsets = [3, 0, 0], sizes = [1, 4, 1], strides = [1, 1, 1]} : vector<9x4x1xf32> to vector<1x4x1xf32>
    %25 = vector.shape_cast %24 : vector<1x4x1xf32> to vector<4x1xf32>
    %26 = vector.broadcast %25 : vector<4x1xf32> to vector<4x64xf32>
    %27 = arith.mulf %23, %26 : vector<4x64xf32>
    %28 = arith.addf %21, %27 : vector<4x64xf32>
    %c0_18 = arith.constant 0 : index
    %c4 = arith.constant 4 : index
    %c0_19 = arith.constant 0 : index
    %c0_20 = arith.constant 0 : index
    %29 = vector.load %arg2[%c0_18, %c4, %c0_19, %c0_20] : memref<1x9x4x64xf32, #tpu.memory_space<vmem>>, vector<1x1x4x64xf32>
    %30 = vector.shape_cast %29 : vector<1x1x4x64xf32> to vector<4x64xf32>
    %31 = vector.extract_strided_slice %0 {offsets = [4, 0, 0], sizes = [1, 4, 1], strides = [1, 1, 1]} : vector<9x4x1xf32> to vector<1x4x1xf32>
    %32 = vector.shape_cast %31 : vector<1x4x1xf32> to vector<4x1xf32>
    %33 = vector.broadcast %32 : vector<4x1xf32> to vector<4x64xf32>
    %34 = arith.mulf %30, %33 : vector<4x64xf32>
    %35 = arith.addf %28, %34 : vector<4x64xf32>
    %c0_21 = arith.constant 0 : index
    %c5 = arith.constant 5 : index
    %c0_22 = arith.constant 0 : index
    %c0_23 = arith.constant 0 : index
    %36 = vector.load %arg2[%c0_21, %c5, %c0_22, %c0_23] : memref<1x9x4x64xf32, #tpu.memory_space<vmem>>, vector<1x1x4x64xf32>
    %37 = vector.shape_cast %36 : vector<1x1x4x64xf32> to vector<4x64xf32>
    %38 = vector.extract_strided_slice %0 {offsets = [5, 0, 0], sizes = [1, 4, 1], strides = [1, 1, 1]} : vector<9x4x1xf32> to vector<1x4x1xf32>
    %39 = vector.shape_cast %38 : vector<1x4x1xf32> to vector<4x1xf32>
    %40 = vector.broadcast %39 : vector<4x1xf32> to vector<4x64xf32>
    %41 = arith.mulf %37, %40 : vector<4x64xf32>
    %42 = arith.addf %35, %41 : vector<4x64xf32>
    %c0_24 = arith.constant 0 : index
    %c6 = arith.constant 6 : index
    %c0_25 = arith.constant 0 : index
    %c0_26 = arith.constant 0 : index
    %43 = vector.load %arg2[%c0_24, %c6, %c0_25, %c0_26] : memref<1x9x4x64xf32, #tpu.memory_space<vmem>>, vector<1x1x4x64xf32>
    %44 = vector.shape_cast %43 : vector<1x1x4x64xf32> to vector<4x64xf32>
    %45 = vector.extract_strided_slice %0 {offsets = [6, 0, 0], sizes = [1, 4, 1], strides = [1, 1, 1]} : vector<9x4x1xf32> to vector<1x4x1xf32>
    %46 = vector.shape_cast %45 : vector<1x4x1xf32> to vector<4x1xf32>
    %47 = vector.broadcast %46 : vector<4x1xf32> to vector<4x64xf32>
    %48 = arith.mulf %44, %47 : vector<4x64xf32>
    %49 = arith.addf %42, %48 : vector<4x64xf32>
    %c0_27 = arith.constant 0 : index
    %c7 = arith.constant 7 : index
    %c0_28 = arith.constant 0 : index
    %c0_29 = arith.constant 0 : index
    %50 = vector.load %arg2[%c0_27, %c7, %c0_28, %c0_29] : memref<1x9x4x64xf32, #tpu.memory_space<vmem>>, vector<1x1x4x64xf32>
    %51 = vector.shape_cast %50 : vector<1x1x4x64xf32> to vector<4x64xf32>
    %52 = vector.extract_strided_slice %0 {offsets = [7, 0, 0], sizes = [1, 4, 1], strides = [1, 1, 1]} : vector<9x4x1xf32> to vector<1x4x1xf32>
    %53 = vector.shape_cast %52 : vector<1x4x1xf32> to vector<4x1xf32>
    %54 = vector.broadcast %53 : vector<4x1xf32> to vector<4x64xf32>
    %55 = arith.mulf %51, %54 : vector<4x64xf32>
    %56 = arith.addf %49, %55 : vector<4x64xf32>
    %c0_30 = arith.constant 0 : index
    %c8 = arith.constant 8 : index
    %c0_31 = arith.constant 0 : index
    %c0_32 = arith.constant 0 : index
    %57 = vector.load %arg2[%c0_30, %c8, %c0_31, %c0_32] : memref<1x9x4x64xf32, #tpu.memory_space<vmem>>, vector<1x1x4x64xf32>
    %58 = vector.shape_cast %57 : vector<1x1x4x64xf32> to vector<4x64xf32>
    %59 = vector.extract_strided_slice %0 {offsets = [8, 0, 0], sizes = [1, 4, 1], strides = [1, 1, 1]} : vector<9x4x1xf32> to vector<1x4x1xf32>
    %60 = vector.shape_cast %59 : vector<1x4x1xf32> to vector<4x1xf32>
    %61 = vector.broadcast %60 : vector<4x1xf32> to vector<4x64xf32>
    %62 = arith.mulf %58, %61 : vector<4x64xf32>
    %63 = arith.addf %56, %62 : vector<4x64xf32>
    %c0_33 = arith.constant 0 : index
    %c0_34 = arith.constant 0 : index
    %64 = vector.load %arg4[%c0_33, %c0_34] : memref<4x1xf32, #tpu.memory_space<vmem>>, vector<4x1xf32>
    %65 = vector.broadcast %64 : vector<4x1xf32> to vector<4x64xf32>
    %66 = arith.addf %63, %65 : vector<4x64xf32>
    %cst = arith.constant 0.000000e+00 : f32
    %67 = vector.broadcast %cst : f32 to vector<4x64xf32>
    %68 = arith.cmpf ogt, %66, %67 : vector<4x64xf32>
    %cst_35 = arith.constant 2.000000e-01 : f32
    %69 = vector.broadcast %cst_35 : f32 to vector<4x64xf32>
    %70 = arith.mulf %69, %66 : vector<4x64xf32>
    %71 = arith.select %68, %66, %70 : vector<4x64xi1>, vector<4x64xf32>
    %72 = vector.extract_strided_slice %1 {offsets = [0, 0, 0], sizes = [1, 8, 1], strides = [1, 1, 1]} : vector<4x8x1xf32> to vector<1x8x1xf32>
    %73 = vector.shape_cast %72 : vector<1x8x1xf32> to vector<8x1xf32>
    %74 = vector.extract_strided_slice %71 {offsets = [0, 0], sizes = [1, 64], strides = [1, 1]} : vector<4x64xf32> to vector<1x64xf32>
    %75 = vector.broadcast %73 : vector<8x1xf32> to vector<8x64xf32>
    %76 = vector.broadcast %74 : vector<1x64xf32> to vector<8x64xf32>
    %77 = arith.mulf %75, %76 : vector<8x64xf32>
    %78 = vector.extract_strided_slice %1 {offsets = [1, 0, 0], sizes = [1, 8, 1], strides = [1, 1, 1]} : vector<4x8x1xf32> to vector<1x8x1xf32>
    %79 = vector.shape_cast %78 : vector<1x8x1xf32> to vector<8x1xf32>
    %80 = vector.extract_strided_slice %71 {offsets = [1, 0], sizes = [1, 64], strides = [1, 1]} : vector<4x64xf32> to vector<1x64xf32>
    %81 = vector.broadcast %79 : vector<8x1xf32> to vector<8x64xf32>
    %82 = vector.broadcast %80 : vector<1x64xf32> to vector<8x64xf32>
    %83 = arith.mulf %81, %82 : vector<8x64xf32>
    %84 = arith.addf %77, %83 : vector<8x64xf32>
    %85 = vector.extract_strided_slice %1 {offsets = [2, 0, 0], sizes = [1, 8, 1], strides = [1, 1, 1]} : vector<4x8x1xf32> to vector<1x8x1xf32>
    %86 = vector.shape_cast %85 : vector<1x8x1xf32> to vector<8x1xf32>
    %87 = vector.extract_strided_slice %71 {offsets = [2, 0], sizes = [1, 64], strides = [1, 1]} : vector<4x64xf32> to vector<1x64xf32>
    %88 = vector.broadcast %86 : vector<8x1xf32> to vector<8x64xf32>
    %89 = vector.broadcast %87 : vector<1x64xf32> to vector<8x64xf32>
    %90 = arith.mulf %88, %89 : vector<8x64xf32>
    %91 = arith.addf %84, %90 : vector<8x64xf32>
    %92 = vector.extract_strided_slice %1 {offsets = [3, 0, 0], sizes = [1, 8, 1], strides = [1, 1, 1]} : vector<4x8x1xf32> to vector<1x8x1xf32>
    %93 = vector.shape_cast %92 : vector<1x8x1xf32> to vector<8x1xf32>
    %94 = vector.extract_strided_slice %71 {offsets = [3, 0], sizes = [1, 64], strides = [1, 1]} : vector<4x64xf32> to vector<1x64xf32>
    %95 = vector.broadcast %93 : vector<8x1xf32> to vector<8x64xf32>
    %96 = vector.broadcast %94 : vector<1x64xf32> to vector<8x64xf32>
    %97 = arith.mulf %95, %96 : vector<8x64xf32>
    %98 = arith.addf %91, %97 : vector<8x64xf32>
    %c0_36 = arith.constant 0 : index
    %c0_37 = arith.constant 0 : index
    %99 = vector.load %arg6[%c0_36, %c0_37] : memref<8x1xf32, #tpu.memory_space<vmem>>, vector<8x1xf32>
    %100 = vector.broadcast %99 : vector<8x1xf32> to vector<8x64xf32>
    %101 = arith.addf %98, %100 : vector<8x64xf32>
    %cst_38 = arith.constant 0.000000e+00 : f32
    %102 = vector.broadcast %cst_38 : f32 to vector<8x64xf32>
    %103 = arith.cmpf ogt, %101, %102 : vector<8x64xf32>
    %cst_39 = arith.constant 2.000000e-01 : f32
    %104 = vector.broadcast %cst_39 : f32 to vector<8x64xf32>
    %105 = arith.mulf %104, %101 : vector<8x64xf32>
    %106 = arith.select %103, %101, %105 : vector<8x64xi1>, vector<8x64xf32>
    %c0_40 = arith.constant 0 : index
    %c0_41 = arith.constant 0 : index
    %c0_42 = arith.constant 0 : index
    %107 = vector.load %arg7[%c0_40, %c0_41, %c0_42] : memref<1x8x64xf32, #tpu.memory_space<vmem>>, vector<1x8x64xf32>
    %108 = vector.shape_cast %107 : vector<1x8x64xf32> to vector<8x64xf32>
    %109 = vector.shape_cast %106 : vector<8x64xf32> to vector<1x8x64xf32>
    tpu.vector_store %arg7[%c0_40, %c0_41, %c0_42], %109 {strides = array<i32>} : memref<1x8x64xf32, #tpu.memory_space<vmem>>, vector<1x8x64xf32>,
    return
  }
  func.func @transform_0(%arg0: i32, %arg1: i32) -> (i32, i32, i32, i32) {
    %c0_i32 = arith.constant 0 : i32
    %c0_i32_0 = arith.constant 0 : i32
    %c0_i32_1 = arith.constant 0 : i32
    return %arg0, %c0_i32, %c0_i32_0, %arg1 : i32, i32, i32, i32
  }
  func.func @transform_1(%arg0: i32, %arg1: i32) -> (i32, i32, i32) {
    %c0_i32 = arith.constant 0 : i32
    %c0_i32_0 = arith.constant 0 : i32
    %c0_i32_1 = arith.constant 0 : i32
    %c0_i32_2 = arith.constant 0 : i32
    return %c0_i32, %c0_i32_0, %c0_i32_1 : i32, i32, i32
  }
  func.func @transform_2(%arg0: i32, %arg1: i32) -> (i32, i32) {
    %c0_i32 = arith.constant 0 : i32
    %c0_i32_0 = arith.constant 0 : i32
    %c0_i32_1 = arith.constant 0 : i32
    return %c0_i32, %c0_i32_0 : i32, i32
  }
  func.func @transform_3(%arg0: i32, %arg1: i32) -> (i32, i32, i32) {
    %c0_i32 = arith.constant 0 : i32
    %c0_i32_0 = arith.constant 0 : i32
    %c0_i32_1 = arith.constant 0 : i32
    %c0_i32_2 = arith.constant 0 : i32
    return %c0_i32, %c0_i32_0, %c0_i32_1 : i32, i32, i32
  }
  func.func @transform_4(%arg0: i32, %arg1: i32) -> (i32, i32) {
    %c0_i32 = arith.constant 0 : i32
    %c0_i32_0 = arith.constant 0 : i32
    %c0_i32_1 = arith.constant 0 : i32
    return %c0_i32, %c0_i32_0 : i32, i32
  }
  func.func @transform_5(%arg0: i32, %arg1: i32) -> (i32, i32, i32) {
    %c0_i32 = arith.constant 0 : i32
    %c0_i32_0 = arith.constant 0 : i32
    return %arg0, %c0_i32, %arg1 : i32, i32, i32
  }
}

</mosaic_0001>

<bundles_post_ra>
// kernel: tpu_custom_call.1
= control target key start
LH: loop header
LB: loop body
LE: loop exit
PB: predicated region body
PF: predicated region fallthrough
CT: control target
= control target key end

     0   :  { %10 = vsyncpa [#allocation3], 0  ;;  %s816_s0 = inlined_call_operand.vmem [shape: f32[2,9,4,64], index: 0, kind: input, shape index: {}]   ;;  %s817_s1 = inlined_call_operand.vmem [shape: f32[9,4,1], index: 1, kind: input, shape index: {}]   ;;  %s818_s2 = inlined_call_operand.vmem [shape: f32[4,1], index: 2, kind: input, shape index: {}]   ;;  %s819_s3 = inlined_call_operand.vmem [shape: f32[4,8,1], index: 3, kind: input, shape index: {}]   ;;  %s820_s4 = inlined_call_operand.vmem [shape: f32[8,1], index: 4, kind: input, shape index: {}]   ;;  %s821_s5 = inlined_call_operand.hbm [shape: f32[2,8,64], index: 5, kind: output, shape index: {}]  }
   0x1   :  { %12 = vsyncpa [#allocation3 + $0x1], 0  ;;  %s674_s18 = smov 0   ;;  %s676_s19 = smov 0  }
   0x2   :  { %s678_s20 = smov 0   ;;  %s680_s21 = smov 0  }
   0x3   :  { %s682_s22 = smov 0   ;;  %s684_s23 = smov 0  }
   0x4 LB: > { %s484_s24 = sadd.s32 4294967295, %s641_s23   ;;  %s485_s25 = sadd.s32 4294967294, %s641_s23   ;;  %s641_s23 = sphi %s684_s23, %s18_s23   ;;  %s637_s22 = sphi %s682_s22, %s828_s22   ;;  %s633_s21 = sphi %s680_s21, %s827_s21   ;;  %s629_s20 = sphi %s678_s20, %s826_s20   ;;  %s625_s19 = sphi %s676_s19, %s825_s19   ;;  %s621_s18 = sphi %s674_s18, %s824_s18  }
   0x5   : > { %s30_s26 = sadd.s32 1, %s637_s22  ;;  %s151_s27 = sadd.s32 1, %s629_s20 }
   0x6   : > { %p32_p0 = scmp.ge.s32.totalorder %s30_s26, 2  ;;  %p161_p1 = scmp.ne.s32.totalorder %s629_s20, %s625_s19 }
   0x7   : > { %p162_p2 = scmp.eq.s32.totalorder %s484_s24, 1  ;;  %p167_p3 = scmp.ne.s32.totalorder %s625_s19, %s621_s18 }
   0x8   : > { %s830_s26 = smov (%p32_p0, %s30_s26), 0  ;;  %p168_p5 = scmp.eq.s32.totalorder %s485_s25, 1 }
   0x9   : > { %p714_p4 = por %p162_p2, %p161_p1  ;;  %s146_s29 = ssub.s32 %s637_s22, %s830_s26 }
   0xa   : > { %p488_p6 = scmp.ge.s32.totalorder %s641_s23, 1  ;;  %p149_p7 = scmp.eq.s32.totalorder %s146_s29, 0 }
   0xb   : > { %p721_p8 = por %p168_p5, %p167_p3  ;;  %p209_p9 = scmp.lt.s32.totalorder %s641_s23, 3 }
   0xc   : > { %s727_s6 = scalar_select %p149_p7, %s629_s20, %s151_s27  }
   0xd   : > { %p210_p10 = pnand %p488_p6, %p209_p9 }
   0xe   : > { %p240_p11 = scmp.lt.s32.totalorder (!%p210_p10), %s633_s21, 1  ;;  %s237_s12 = sand.u32 (!%p210_p10), 1, %s625_s19  }
   0xf   : > { %213 = sbr.rel (%p210_p10) target bundleno = 187 (0xbb), region = 40  ;;  %s489_s13 = sshll.u32 (!%p210_p10), %s237_s12, 3 }
  0x10   : > { %s500_s14 = sshll.u32 (!%p210_p10), %s633_s21, 3  ;;  %s239_s24 = scalar_lea.vmem (!%p210_p10), [#allocation2], %s489_s13 }
  0x11   : > { %s405_s17 = scalar_lea.hbm (!%p210_p10), %s821_s5, %s500_s14  ;;  %s407_s25 = sshll.u32 (!%p210_p10), %s239_s24, 4  ;;  %s408_s25 = int_to_ptr.vmem [resolvable:$true] %s407_s25 }
  0x12   : > { %s409_s27 = sshll.u32 (!%p210_p10), %s405_s17, 4  ;;  %s583_s10 = scalar_lea.hbm (!%p210_p10), %s821_s5, 16  ;;  %s410_s27 = int_to_ptr.hbm [resolvable:$true] %s409_s27 }
  0x13   : > { %s577_s29 = sshra.s32 (!%p210_p10), %s410_s27, 4  ;;  %s578_s29 = int_to_ptr.hbm [resolvable:$true] %s577_s29 }
  0x14   : > { %v252_v0 = vld [vmem:[%s817_s1 + $0x10] sm:$0xf]  ;;  %v250_v1 = vld [vmem:[%s817_s1 + $0x8] sm:$0xf]  ;;  %v643_v2 = vmov 0   ;;  %v257_v11 = vld [vmem:[%s819_s3] sm:$0xff]  ;;  %p584_p1 = scmp.lt.s32.totalorder %s578_s29, %s821_s5 }
  0x15   : > { %562 = vset.pattern.permute.xlu2 %v643_v2  ;;  %561 = vset.pattern.permute.xlu1 %v643_v2  ;;  %v248_v3 = vld [vmem:[%s817_s1] sm:$0xf]  ;;  %v253_v4 = vld [vmem:[%s817_s1 + $0x14] sm:$0xf]  ;;  %v251_v5 = vld [vmem:[%s817_s1 + $0xc] sm:$0xf] }
  0x16   : > { %560 = vset.pattern.permute.xlu0 %v643_v2  ;;  %299 = vperm.xlu2 %562, %v252_v0   ;;  %v249_v6 = vld [vmem:[%s817_s1 + $0x4] sm:$0xf]  ;;  %v256_v7 = vld [vmem:[%s817_s1 + $0x20] sm:$0xf]  ;;  %v255_v8 = vld [vmem:[%s817_s1 + $0x1c] sm:$0xf] }
  0x17   : > { %281 = vperm.xlu1 %561, %v250_v1   ;;  %264 = vperm.xlu0 %560, %v248_v3   ;;  %v254_v9 = vld [vmem:[%s817_s1 + $0x18] sm:$0xf]  ;;  %v258_v10 = vld [vmem:[%s819_s3 + $0x8] sm:$0xff]  ;;  %v340_v12 = vld [vmem:[%s818_s2] sm:$0xf]  ;;  %s241_s7 = scalar_select %p240_p11, %s633_s21, 1 }
  0x18   : > { %v381_v13 = vld [vmem:[%s820_s4] sm:$0xff]  ;;  %v260_v14 = vld [vmem:[%s819_s3 + $0x18] sm:$0xff]  ;;  %v259_v15 = vld [vmem:[%s819_s3 + $0x10] sm:$0xff]  ;;  %vm391_vm2 = vcmask 523264   ;;  %s394_s21 = scalar_lea.sflag [#allocation3], %s237_s12 }
  0x19   : > { %s503_s8 = smul.u32 36, %s241_s7  ;;  %s579_s7 = scalar_lea.hbm %s578_s29, 8 }
  0x1a   : > { %p580_p12 = scmp.ne.s32.totalorder %s578_s29, %s579_s7  ;;  %p585_p2 = scmp.lt.s32.totalorder %s583_s10, %s579_s7 }
  0x1b   : > { %s247_s11 = scalar_lea.vmem %s816_s0, %s503_s8 }
  0x1c   : > { %v261_v19 = vld [vmem:[%s247_s11] sm:$0xf]  ;;  %v491_v20 = vld [vmem:[%s247_s11 + $0x4] sm:$0xf]  ;;  %v492_v21 = vld [vmem:[%s247_s11 + $0x8] sm:$0xf]  ;;  %p581_p13 = pnand %p580_p12, %p714_p4  ;;  %p586_p3 = por %p585_p2, %p584_p1 }
  0x1d   : > { %v493_v26 = vld [vmem:[%s247_s11 + $0xc] sm:$0xf]  ;;  %v494_v30 = vld [vmem:[%s247_s11 + $0x10] sm:$0xf]  ;;  %v495_v33 = vld [vmem:[%s247_s11 + $0x14] sm:$0xf] }
  0x1e   : > { %308 = vperm.xlu2 %562, %v253_v4   ;;  %v496_v38 = vld [vmem:[%s247_s11 + $0x18] sm:$0xf]  ;;  %v497_v41 = vld [vmem:[%s247_s11 + $0x1c] sm:$0xf]  ;;  %v498_v44 = vld [vmem:[%s247_s11 + $0x20] sm:$0xf]  ;;  %p582_p0 = pneg %p581_p13 }
  0x1f   : > { %290 = vperm.xlu1 %561, %v251_v5   ;;  %272 = vperm.xlu0 %560, %v249_v6  }
  0x20   : > { %p587_p5 = pnand %p586_p3, %p582_p0 }
  0x26   : > { %335 = vperm.xlu2 %562, %v256_v7  }
  0x27   : > { %326 = vperm.xlu1 %561, %v255_v8   ;;  %317 = vperm.xlu0 %560, %v254_v9  }
  0x2e   : > { %359 = vperm.xlu2 %562, %v258_v10  }
  0x2f   : > { %352 = vperm.xlu1 %561, %v257_v11   ;;  %343 = vperm.xlu0 %560, %v340_v12  }
  0x36   : > { %384 = vperm.xlu2 %562, %v381_v13  }
  0x37   : > { %375 = vperm.xlu1 %561, %v260_v14   ;;  %367 = vperm.xlu0 %560, %v259_v15  }
  0x70   : > { %v300_v18 = vpop.permute.xlu2 %299 }
  0x71   : > { %v302_v34 = vmul.f32 %v494_v30, %v300_v18 }
  0x78   : > { %v309_v27 = vpop.permute.xlu2 %308 }
  0x79   : > { %v311_v39 = vmul.f32 %v495_v33, %v309_v27 }
  0x80   : > { %v336_v45 = vpop.permute.xlu2 %335 }
  0x81   : > { %v338_v48 = vmul.f32 %v498_v44, %v336_v45 }
  0x88   : > { %v360_v55 = vpop.permute.xlu2 %359 }
  0x89   : > { %v282_v16 = vpop.permute.xlu1 %281  ;;  %v265_v17 = vpop.permute.xlu0 %264 }
  0x8a   : > { %v267_v24 = vmul.f32 %v265_v17, %v261_v19  ;;  %v284_v28 = vmul.f32 %v492_v21, %v282_v16 }
  0x90   : > { %v385_v6 = vpop.permute.xlu2 %384 }
  0x91   : > { %v291_v22 = vpop.permute.xlu1 %290  ;;  %v273_v23 = vpop.permute.xlu0 %272 }
  0x92   : > { %v275_v25 = vmul.f32 %v491_v20, %v273_v23  ;;  %v293_v31 = vmul.f32 %v493_v26, %v291_v22 }
  0x94   : > { %v276_v29 = vadd.f32 %v275_v25, %v267_v24 }
  0x96   : > { %v285_v32 = vadd.f32 %v284_v28, %v276_v29 }
  0x98   : > { %v294_v35 = vadd.f32 %v293_v31, %v285_v32 }
  0x99   : > { %v327_v36 = vpop.permute.xlu1 %326  ;;  %v318_v37 = vpop.permute.xlu0 %317 }
  0x9a   : > { %v303_v40 = vadd.f32 %v302_v34, %v294_v35  ;;  %v320_v43 = vmul.f32 %v496_v38, %v318_v37  ;;  %v329_v46 = vmul.f32 %v497_v41, %v327_v36 }
  0x9c   : > { %v312_v42 = vadd.f32 %v311_v39, %v303_v40 }
  0x9e   : > { %v321_v47 = vadd.f32 %v320_v43, %v312_v42 }
  0xa0   : > { %v330_v49 = vadd.f32 %v329_v46, %v321_v47 }
  0xa1   : > { %v344_v50 = vpop.permute.xlu0 %343  ;;  %v353_v51 = vpop.permute.xlu1 %352 }
  0xa2   : > { %v339_v52 = vadd.f32 %v338_v48, %v330_v49 }
  0xa4   : > { %v346_v53 = vadd.f32 %v344_v50, %v339_v52 }
  0xa6   : > { %vm347_vm0 = vcmp.gt.f32.partialorder %v346_v53, 0.0  ;;  %v348_v54 = vmul.f32 0.2, %v346_v53 }
  0xa8   : > { %v349_v56 = vsel %vm347_vm0, %v346_v53, %v348_v54 }
  0xa9   : > { %v355_v57 = vperm.slane %v349_v56, 0  ;;  %v362_v58 = vperm.slane %v349_v56, 1  ;;  %v370_v59 = vperm.slane %v349_v56, 2  ;;  %v368_v60 = vpop.permute.xlu0 %367  ;;  %v378_v61 = vperm.slane %v349_v56, 3  ;;  %v376_v0 = vpop.permute.xlu1 %375 }
  0xab   : > { %v356_v62 = vmul.f32 %v355_v57, %v353_v51  ;;  %v363_v63 = vmul.f32 %v362_v58, %v360_v55  ;;  %v371_v2 = vmul.f32 %v370_v59, %v368_v60  ;;  %v379_v3 = vmul.f32 %v378_v61, %v376_v0 }
  0xad   : > { %v364_v1 = vadd.f32 %v363_v63, %v356_v62 }
  0xaf   : > { %v372_v4 = vadd.f32 %v371_v2, %v364_v1 }
  0xb1   : > { %v380_v5 = vadd.f32 %v379_v3, %v372_v4 }
  0xb3   : > { %v387_v7 = vadd.f32 %v385_v6, %v380_v5 }
  0xb5   : > { %vm388_vm1 = vcmp.gt.f32.partialorder %v387_v7, 0.0  ;;  %v389_v8 = vmul.f32 0.2, %v387_v7 }
  0xb7   : > { %v390_v9 = vsel %vm388_vm1, %v387_v7, %v389_v8 }
  0xb8   : > { %392 = vst.msk [vmem:[%s239_s24] sm:$0xff] %vm391_vm2, %v390_v9 }
  0xb9   : > { %590 = shalt.err (!%p587_p5)
}
  0xba   : > { %504 = dma.vmem_to_hbm [thread:$0]  (%p714_p4), %s408_s25, 128, %s410_s27, %s394_s21  }
  0xbb PF: > { %p510_p6 = scmp.ge.s32.totalorder %s641_s23, 2  ;;  %s421_s12 = sand.u32 1, %s621_s18  }
  0xbc   : > { %s422_s14 = scalar_lea.sflag [#allocation3], %s421_s12 }
  0xbd   : > { %p507_p7 = pnand %p510_p6, %p721_p8 }
  0xbf   : > { %p508_p9 = pneg %p507_p7 }
  0xc1   : > { %616 = dma.done.wait (%p508_p9), %s422_s14, 128  }
  0xc2   : > { %618 = vsyncadd (%p508_p9), %s422_s14, 4294967168  ;;  %s18_s23 = sadd.s32 1, %s641_s23   ;;  %s824_s18 = smov %s625_s19 }
  0xc3   : > { %p15_p10 = scmp.ge.s32.totalorder %s18_s23, 4   ;;  %s825_s19 = smov %s629_s20 }
  0xc4   : > { %s826_s20 = smov %s727_s6  ;;  %s827_s21 = smov %s637_s22 }
  0xc5   : > { %s828_s22 = smov %s830_s26  ;;  %17 = sbr.rel (!%p15_p10) target bundleno = 4 (0x4), region = 83 }
  0xca   :  { %428 = vsyncpa [#allocation3], 1 }
  0xcb   :  { %430 = vsyncpa [#allocation3 + $0x1], 1 }

</bundles_post_ra>
